<compile_context>
chip_gen: v7x
topology: tpu7x:2x2x1
jax: 0.10.0
libtpu: 0.0.40
codegen_flags: <defaults>
</compile_context>

<pallas_src>
import functools

import jax
import jax.numpy as jnp
from jax.experimental import pallas as pl
from jax.experimental.pallas import tpu as pltpu


def _nll_loss_kernel(inp_ref, tgt_ref, out_ref, acc_ref, *, total_n, tn):
    s = pl.program_id(0)            # parallel split (TensorCore shard on v7x)
    i = pl.program_id(1)            # row-block index within this split

    @pl.when(i == 0)
    def _init():
        acc_ref[...] = jnp.zeros_like(acc_ref)

    x = inp_ref[...]                # (TN, C), native dtype — no full-tile f32 cast
    tgt = tgt_ref[...]              # (TN, 1) int32
    bn, c = x.shape

    # Gather the target probability via one-hot select, in native dtype.
    # (Summing a row with exactly one non-zero is exact in bf16/fp8 too.)
    class_ids = jax.lax.broadcasted_iota(jnp.int32, (bn, c), 1)
    picked = jnp.sum(jnp.where(class_ids == tgt, x, jnp.zeros_like(x)),
                     axis=1, keepdims=True)                     # (TN, 1) native dtype
    picked = picked.astype(jnp.float32)                         # cast only TN values

    # Mask rows past the real N (padded partial tile or clamped OOB block):
    # force log(1.0) == 0 contribution. Select-based, so NaN/garbage cannot leak.
    blk = s * pl.num_programs(1) + i
    row_ids = blk * tn + jax.lax.broadcasted_iota(jnp.int32, (bn, 1), 0)
    picked = jnp.where(row_ids < total_n, picked + 1e-9, 1.0)

    acc_ref[...] += jnp.log(picked)                             # ONE transcendental per row

    @pl.when(i == pl.num_programs(1) - 1)
    def _finalize():
        # Partial of -mean over this split's rows: scale by compile-time -1/N once.
        out_ref[...] = jnp.sum(acc_ref[...], keepdims=True) * (-1.0 / total_n)


def custom_loss(input_probs: jax.Array, target: jax.Array, *, tn: int = 1024) -> jax.Array:
    """input_probs: (N, C) probabilities (any float dtype), target: (N,) int class ids."""
    n, c = input_probs.shape
    itemsize = input_probs.dtype.itemsize

    # ~8 MiB per input tile in the native dtype. Double-buffered: ~16 MiB, well inside
    # the 32 MiB scoped limit requested below (v7x physical VMEM is 64 MiB).
    tile_budget = 8 << 20
    bytes_per_row = itemsize * c
    max_rows = max(8, (tile_budget // bytes_per_row) // 8 * 8)
    # TODO(synk): for very wide C (roughly > 1M f32 columns) even an 8-row tile blows the
    # budget; a column-tiled / scalar-prefetch gather path (DMA only the 128-lane block
    # containing each row's target) would cut HBM traffic ~C/128x — not implemented here.
    tn = min(tn, max_rows)
    if tn >= n:
        tn = n                      # single full block (full-array block shape is always legal)

    nb = pl.cdiv(n, tn)                 # total row blocks
    num_splits = 2 if nb >= 2 else 1    # v7x has 2 TensorCores; harmless on 1-TC chips
    bps = pl.cdiv(nb, num_splits)       # row blocks per split

    # Clamp the row-block index so a split's trailing (fully out-of-range) block re-reads
    # the last valid block; those rows are masked out in-kernel via the row_ids check.
    def in_map(s, i):
        return (jnp.minimum(s * bps + i, nb - 1), 0)

    tgt2d = target.astype(jnp.int32).reshape(n, 1)
    kernel = functools.partial(_nll_loss_kernel, total_n=n, tn=tn)

    out = pl.pallas_call(
        kernel,
        out_shape=jax.ShapeDtypeStruct((num_splits, 1, 1), jnp.float32),
        grid=(num_splits, bps),
        in_specs=[
            pl.BlockSpec((tn, c), in_map),   # input tile, native dtype
            pl.BlockSpec((tn, 1), in_map),   # per-row int32 targets
        ],
        out_specs=pl.BlockSpec((None, 1, 1), lambda s, i: (s, 0, 0)),  # one block per split
        scratch_shapes=[pltpu.VMEM((tn, 1), jnp.float32)],             # per-row logp accumulator
        compiler_params=pltpu.CompilerParams(
            dimension_semantics=("parallel", "arbitrary"),
            vmem_limit_bytes=32 * 1024 * 1024,
        ),
    )(input_probs, tgt2d)
    return jnp.sum(out)   # sum per-split partials (each already scaled by -1/N)


if __name__ == "__main__":
    key = jax.random.PRNGKey(0)
    k_logits, k_tgt = jax.random.split(key)

    # Small shapes; N=24 with tn=16 exercises the 2-split grid + masked partial tile.
    N, C = 24, 32
    logits = jax.random.normal(k_logits, (N, C), dtype=jnp.float32)
    probs = jax.nn.softmax(logits, axis=-1)           # positive "input" like a prob dist
    target = jax.random.randint(k_tgt, (N,), 0, C, dtype=jnp.int32)

    # Pure-JAX reference (same math as torch.log(x + 1e-9) + F.nll_loss, mean reduction)
    ref = -jnp.mean(jnp.log(probs + 1e-9)[jnp.arange(N), target])

    loss = custom_loss(probs, target, tn=16)          # multi-block, 2-split path
    jax.block_until_ready(loss)
    assert jnp.allclose(loss, ref, atol=1e-5, rtol=1e-5), (loss, ref)

    loss1 = custom_loss(probs, target)                # single-block path (tn >= N)
    jax.block_until_ready(loss1)
    assert jnp.allclose(loss1, ref, atol=1e-5, rtol=1e-5), (loss1, ref)

    # Odd block count -> exercises the clamped, fully-masked trailing block of split 1.
    N2 = 40
    logits2 = jax.random.normal(jax.random.PRNGKey(1), (N2, C), dtype=jnp.float32)
    probs2 = jax.nn.softmax(logits2, axis=-1)
    target2 = jax.random.randint(jax.random.PRNGKey(2), (N2,), 0, C, dtype=jnp.int32)
    ref2 = -jnp.mean(jnp.log(probs2 + 1e-9)[jnp.arange(N2), target2])
    loss2 = custom_loss(probs2, target2, tn=16)
    jax.block_until_ready(loss2)
    assert jnp.allclose(loss2, ref2, atol=1e-5, rtol=1e-5), (loss2, ref2)

    # bf16 input: native-dtype gather path; cast-after-gather matches log(f32(x)+1e-9).
    probs_bf16 = probs.astype(jnp.bfloat16)
    ref_bf16 = -jnp.mean(jnp.log(probs_bf16.astype(jnp.float32) + 1e-9)[jnp.arange(N), target])
    loss_bf16 = custom_loss(probs_bf16, target, tn=16)
    jax.block_until_ready(loss_bf16)
    assert jnp.allclose(loss_bf16, ref_bf16, atol=1e-5, rtol=1e-5), (loss_bf16, ref_bf16)

    # TODO(synk): nll_loss ignore_index/weight options are not reproduced (module uses defaults).
    print("KERNEL_OK")
</pallas_src>

<mosaic_0001>
module attributes {stable_mosaic.version = 11 : i64} {
  func.func @_nll_loss_kernel(%arg0: i32, %arg1: i32, %arg2: memref<16x32xf32, #tpu.memory_space<vmem>>, %arg3: memref<16x1xi32, #tpu.memory_space<vmem>>, %arg4: memref<1x1x1xf32, #tpu.memory_space<vmem>>, %arg5: memref<16x1xf32, #tpu.memory_space<vmem>>) attributes {dimension_semantics = [#tpu.dimension_semantics<parallel>, #tpu.dimension_semantics<arbitrary>], iteration_bounds = array<i64: 2, 1>, scalar_prefetch = 0 : i64, scratch_operands = 1 : i64, tpu.core_type = #tpu.core_type<tc>, window_params = [{transform_indices = @transform_0, window_bounds = array<i64: 16, 32>}, {transform_indices = @transform_1, window_bounds = array<i64: 16, 1>}, {transform_indices = @transform_2, window_bounds = array<i64: 1, 1, 1>}]} {
    %c0_i32 = arith.constant 0 : i32
    %0 = arith.cmpi eq, %arg1, %c0_i32 : i32
    %1 = arith.extui %0 : i1 to i32
    %c0_i32_0 = arith.constant 0 : i32
    %2 = arith.cmpi ne, %1, %c0_i32_0 : i32
    scf.if %2 {
      %cst_13 = arith.constant 0.000000e+00 : f32
      %31 = vector.broadcast %cst_13 : f32 to vector<16x1xf32>
      %c0_14 = arith.constant 0 : index
      %c0_15 = arith.constant 0 : index
      %32 = vector.load %arg5[%c0_14, %c0_15] : memref<16x1xf32, #tpu.memory_space<vmem>>, vector<16x1xf32>
      tpu.vector_store %arg5[%c0_14, %c0_15], %31 {strides = array<i32>} : memref<16x1xf32, #tpu.memory_space<vmem>>, vector<16x1xf32>,
    } else {
    }
    %c0 = arith.constant 0 : index
    %c0_1 = arith.constant 0 : index
    %3 = vector.load %arg2[%c0, %c0_1] : memref<16x32xf32, #tpu.memory_space<vmem>>, vector<16x32xf32>
    %c0_2 = arith.constant 0 : index
    %c0_3 = arith.constant 0 : index
    %4 = vector.load %arg3[%c0_2, %c0_3] : memref<16x1xi32, #tpu.memory_space<vmem>>, vector<16x1xi32>
    %5 = tpu.iota {dimensions = array<i32: 1>} : vector<16x32xi32>
    %6 = vector.broadcast %4 : vector<16x1xi32> to vector<16x32xi32>
    %7 = arith.cmpi eq, %5, %6 : vector<16x32xi32>
    %cst = arith.constant 0.000000e+00 : f32
    %8 = vector.broadcast %cst : f32 to vector<16x32xf32>
    %9 = arith.select %7, %3, %8 : vector<16x32xi1>, vector<16x32xf32>
    %cst_4 = arith.constant dense<0.000000e+00> : vector<16xf32>
    %10 = vector.multi_reduction <add>, %9, %cst_4 [1] : vector<16x32xf32> to vector<16xf32>
    %11 = vector.shape_cast %10 : vector<16xf32> to vector<16x1xf32>
    %c1_i32 = arith.constant 1 : i32
    %12 = arith.muli %arg0, %c1_i32 : i32
    %13 = arith.addi %12, %arg1 : i32
    %c16_i32 = arith.constant 16 : i32
    %14 = arith.muli %13, %c16_i32 : i32
    %15 = tpu.iota {dimensions = array<i32: 0>} : vector<16x1xi32>
    %16 = vector.broadcast %14 : i32 to vector<16x1xi32>
    %17 = arith.addi %16, %15 : vector<16x1xi32>
    %c24_i32 = arith.constant 24 : i32
    %18 = vector.broadcast %c24_i32 : i32 to vector<16x1xi32>
    %19 = arith.cmpi slt, %17, %18 : vector<16x1xi32>
    %cst_5 = arith.constant 9.99999971E-10 : f32
    %20 = vector.broadcast %cst_5 : f32 to vector<16x1xf32>
    %21 = arith.addf %11, %20 : vector<16x1xf32>
    %cst_6 = arith.constant 1.000000e+00 : f32
    %22 = vector.broadcast %cst_6 : f32 to vector<16x1xf32>
    %23 = arith.select %19, %21, %22 : vector<16x1xi1>, vector<16x1xf32>
    %c0_7 = arith.constant 0 : index
    %c0_8 = arith.constant 0 : index
    %24 = vector.load %arg5[%c0_7, %c0_8] : memref<16x1xf32, #tpu.memory_space<vmem>>, vector<16x1xf32>
    %25 = math.log %23 : vector<16x1xf32>
    %26 = arith.addf %24, %25 : vector<16x1xf32>
    %c0_9 = arith.constant 0 : index
    %c0_10 = arith.constant 0 : index
    %27 = vector.load %arg5[%c0_9, %c0_10] : memref<16x1xf32, #tpu.memory_space<vmem>>, vector<16x1xf32>
    tpu.vector_store %arg5[%c0_9, %c0_10], %26 {strides = array<i32>} : memref<16x1xf32, #tpu.memory_space<vmem>>, vector<16x1xf32>,
    %c0_i32_11 = arith.constant 0 : i32
    %28 = arith.cmpi eq, %arg1, %c0_i32_11 : i32
    %29 = arith.extui %28 : i1 to i32
    %c0_i32_12 = arith.constant 0 : i32
    %30 = arith.cmpi ne, %29, %c0_i32_12 : i32
    scf.if %30 {
      %c0_13 = arith.constant 0 : index
      %c0_14 = arith.constant 0 : index
      %31 = vector.load %arg5[%c0_13, %c0_14] : memref<16x1xf32, #tpu.memory_space<vmem>>, vector<16x1xf32>
      %32 = vector.shape_cast %31 : vector<16x1xf32> to vector<1x16x1xf32>
      %cst_15 = arith.constant dense<0.000000e+00> : vector<1xf32>
      %33 = vector.multi_reduction <add>, %32, %cst_15 [1, 2] : vector<1x16x1xf32> to vector<1xf32>
      %34 = vector.shape_cast %33 : vector<1xf32> to vector<1x1x1xf32>
      %35 = vector.extract %34[0, 0, 0] : f32 from vector<1x1x1xf32>
      %36 = vector.broadcast %35 : f32 to vector<1x1xf32>
      %cst_16 = arith.constant -0.0416666679 : f32
      %37 = vector.broadcast %cst_16 : f32 to vector<1x1xf32>
      %38 = arith.mulf %36, %37 : vector<1x1xf32>
      %c0_17 = arith.constant 0 : index
      %c0_18 = arith.constant 0 : index
      %c0_19 = arith.constant 0 : index
      %39 = vector.load %arg4[%c0_17, %c0_18, %c0_19] : memref<1x1x1xf32, #tpu.memory_space<vmem>>, vector<1x1x1xf32>
      %40 = vector.shape_cast %39 : vector<1x1x1xf32> to vector<1x1xf32>
      %41 = vector.shape_cast %38 : vector<1x1xf32> to vector<1x1x1xf32>
      tpu.vector_store %arg4[%c0_17, %c0_18, %c0_19], %41 {strides = array<i32>} : memref<1x1x1xf32, #tpu.memory_space<vmem>>, vector<1x1x1xf32>,
    } else {
    }
    return
  }
  func.func @transform_0(%arg0: i32, %arg1: i32) -> (i32, i32) {
    %c1_i32 = arith.constant 1 : i32
    %0 = arith.muli %arg0, %c1_i32 : i32
    %1 = arith.addi %0, %arg1 : i32
    %c1_i32_0 = arith.constant 1 : i32
    %2 = arith.minsi %1, %c1_i32_0 : i32
    %c0_i32 = arith.constant 0 : i32
    %c0_i32_1 = arith.constant 0 : i32
    return %2, %c0_i32 : i32, i32
  }
  func.func @transform_1(%arg0: i32, %arg1: i32) -> (i32, i32) {
    %c1_i32 = arith.constant 1 : i32
    %0 = arith.muli %arg0, %c1_i32 : i32
    %1 = arith.addi %0, %arg1 : i32
    %c1_i32_0 = arith.constant 1 : i32
    %2 = arith.minsi %1, %c1_i32_0 : i32
    %c0_i32 = arith.constant 0 : i32
    %c0_i32_1 = arith.constant 0 : i32
    return %2, %c0_i32 : i32, i32
  }
  func.func @transform_2(%arg0: i32, %arg1: i32) -> (i32, i32, i32) {
    %c0_i32 = arith.constant 0 : i32
    %c0_i32_0 = arith.constant 0 : i32
    %c0_i32_1 = arith.constant 0 : i32
    return %arg0, %c0_i32, %c0_i32_0 : i32, i32, i32
  }
}

</mosaic_0001>

<bundles_post_ra>
// kernel: tpu_custom_call.1
= control target key start
LH: loop header
LB: loop body
LE: loop exit
PB: predicated region body
PF: predicated region fallthrough
CT: control target
= control target key end

     0   :  { %s487_s9 = smov 0   ;;  %s489_s10 = smov 0   ;;  %s538_s0 = inlined_call_operand.vmem [shape: f32[24,32], index: 0, kind: input, shape index: {}]   ;;  %s539_s1 = inlined_call_operand.vmem [shape: s32[24,1], index: 1, kind: input, shape index: {}]   ;;  %s540_s2 = inlined_call_operand.vmem [shape: f32[2,1,1], index: 2, kind: output, shape index: {}]  }
   0x1   :  { %s491_s11 = smov 0  }
   0x2 LB: > { %s24_s12 = sadd.s32 1, %s464_s10  ;;  %p405_p0 = scmp.ge.s32.totalorder %s468_s11, 1  ;;  %s468_s11 = sphi %s491_s11, %s12_s11   ;;  %s464_s10 = sphi %s489_s10, %s542_s10   ;;  %s460_s9 = sphi %s487_s9, %s541_s9  }
   0x3   : > { %p26_p1 = scmp.ge.s32.totalorder %s24_s12, 2  ;;  %p176_p2 = scmp.lt.s32.totalorder %s468_s11, 3 }
   0x5   : > { %s544_s12 = smov (%p26_p1, %s24_s12), 0  ;;  %p177_p3 = pnand %p405_p0, %p176_p2 }
   0x6   : > { %p216_p4 = scmp.lt.s32.totalorder (!%p177_p3), %s460_s9, 1  ;;  %v470_v0 = vmov (!%p177_p3), 0   ;;  %vm262_vm0 = vcmask (!%p177_p3), 7168   ;;  %v471_v3 = vmov (!%p177_p3), 0.0   ;;  %v269_v4 = vlaneseq (!%p177_p3)  ;;  %s410_s22 = sshll.u32 (!%p177_p3), %s460_s9, 4 }
   0x7   : > { %180 = sbr.rel (%p177_p3) target bundleno = 537 (0x219), region = 28  ;;  %441 = vset.pattern.permute.xlu0 (!%p177_p3), %v470_v0  ;;  %263 = vst.msk [vmem:[#allocation2] sm:$0xff] (!%p177_p3), %vm262_vm0, %v471_v3  ;;  %264 = vst.msk [vmem:[#allocation2 + $0x8] sm:$0xff] (!%p177_p3), %vm262_vm0, %v471_v3  ;;  %vm281_vm1 = vcmask (!%p177_p3), 261120   ;;  %v293_v15 = vstv (!%p177_p3), %s410_s22  ;;  %vm332_vm6 = vcmask (!%p177_p3), 0  }
   0x8   : > { %v270_v5 = vand.u32 (!%p177_p3), 127, %v269_v4  ;;  %v291_v14 = vshrl.u32 (!%p177_p3), %v269_v4, 7 }
   0xa   : > { %v294_v16 = vadd.s32 (!%p177_p3), %v293_v15, %v291_v14  ;;  %v292_v17 = vadd.s32 (!%p177_p3), 8, %v291_v14 }
   0xc   : > { %vm296_vm4 = vcmp.lt.s32.totalorder (!%p177_p3), %v294_v16, 24  ;;  %v295_v19 = vadd.s32 (!%p177_p3), %v293_v15, %v292_v17 }
   0xe   : > { %s509_s13 = scalar_select %p216_p4, %s460_s9, 1  ;;  %vm297_vm5 = vcmp.lt.s32.totalorder %v295_v19, 24  ;;  %v302_v26 = vld [vmem:[#allocation2] sm:$0xff]  ;;  %v303_v30 = vld [vmem:[#allocation2 + $0x8] sm:$0xff] }
  0x10   : > { %s406_s14 = sshll.u32 %s509_s13, 1  ;;  %s257_s26 = scalar_lea.vmem %s540_s2, %s509_s13 }
  0x11   : > { %p223_p5 = scmp.lt.s32.totalorder %s406_s14, 2 }
  0x13   : > { %s546_s14 = smov (!%p223_p5, %s406_s14), 2 }
  0x14   : > { %s407_s15 = sshll.u32 %s546_s14, 3 }
  0x15   : > { %s246_s18 = scalar_lea.vmem %s539_s1, %s407_s15  ;;  %s226_s21 = scalar_lea.vmem %s538_s0, %s407_s15 }
  0x16   : > { %v267_v1 = vld [vmem:[%s246_s18] sm:$0xff]  ;;  %v268_v2 = vld [vmem:[%s246_s18 + $0x8] sm:$0xff] }
  0x17   : > { %272 = vperm.xlu0 %441, %v267_v1   ;;  %v265_v6 = vld [vmem:[%s226_s21] sm:$0xff]  ;;  %v266_v10 = vld [vmem:[%s226_s21 + $0x8] sm:$0xff] }
  0x1b   : > { %275 = vperm.xlu0 %441, %v268_v2  }
  0x96   : > { %v273_v7 = vpop.permute.xlu0 %272 }
  0x97   : > { %vm277_vm2 = vcmp.eq.s32.totalorder %v270_v5, %v273_v7 }
  0x98   : > { %v279_v8 = vsel %vm277_vm2, %v265_v6, 0.0 }
  0x99   : > { %v282_v9 = vsel %vm281_vm1, %v279_v8, 0.0 }
  0x9a   : > { %v276_v11 = vpop.permute.xlu0 %275  ;;  %283 = vadd.xlane.f32.xlu1 %v282_v9 }
  0x9b   : > { %vm278_vm3 = vcmp.eq.s32.totalorder %v270_v5, %v276_v11 }
  0x9c   : > { %v280_v12 = vsel %vm278_vm3, %v266_v10, 0.0 }
  0x9d   : > { %v285_v13 = vsel %vm281_vm1, %v280_v12, 0.0 }
  0x9e   : > { %286 = vadd.xlane.f32.xlu1 %v285_v13 }
 0x127   : > { %v284_v18 = vpop.xlane.xlu1 %283 }
 0x128   : > { %v298_v20 = vadd.f32 1e-09, %v284_v18 }
 0x12a   : > { %v300_v21 = vsel %vm296_vm4, %v298_v20, 1.0 }
 0x12b   : > { %442 = vlog2.f32 %v300_v21  ;;  %v287_v22 = vpop.xlane.xlu1 %286 }
 0x12c   : > { %v299_v23 = vadd.f32 1e-09, %v287_v22 }
 0x12e   : > { %v301_v24 = vsel %vm297_vm5, %v299_v23, 1.0 }
 0x12f   : > { %444 = vlog2.f32 %v301_v24 }
 0x135   : > { %v443_v25 = vpop.eup %442 }
 0x136   : > { %v305_v27 = vmul.f32 0.6931472, %v443_v25 }
 0x138   : > { %v308_v28 = vadd.f32 %v305_v27, %v302_v26 }
 0x139   : > { %v445_v29 = vpop.eup %444 }
 0x13a   : > { %311 = vst.msk [vmem:[#allocation2] sm:$0xff] %vm262_vm0, %v308_v28  ;;  %v307_v31 = vmul.f32 0.6931472, %v445_v29 }
 0x13c   : > { %v309_v32 = vadd.f32 %v307_v31, %v303_v30 }
 0x13e   : > { %312 = vst.msk [vmem:[#allocation2 + $0x8] sm:$0xff] %vm262_vm0, %v309_v32 }
 0x141   : > { %v316_v33 = vld [vmem:[#allocation2] sm:$0xff] }
 0x142   : > { %v318_v35 = vsel %vm262_vm0, %v316_v33, 0.0 }
 0x145   : > { %v317_v34 = vld [vmem:[#allocation2 + $0x8] sm:$0xff] }
 0x146   : > { %v319_v36 = vsel %vm262_vm0, %v317_v34, 0.0 }
 0x147   : > { %v320_v37 = vadd.f32 %v319_v36, %v318_v35 }
 0x149   : > { %321 = vadd.xlane.f32.xlu0 %v320_v37 }
 0x1d6   : > { %v322_v38 = vpop.xlane.xlu0 %321 }
 0x1d7   : > { %v323_v39 = vrot.slane %v322_v38, 4 }
 0x1d9   : > { %v324_v40 = vadd.f32 %v323_v39, %v322_v38 }
 0x1db   : > { %v325_v41 = vrot.slane %v324_v40, 2 }
 0x1dd   : > { %v326_v42 = vadd.f32 %v325_v41, %v324_v40 }
 0x1df   : > { %v327_v43 = vrot.slane %v326_v42, 1 }
 0x1e1   : > { %v328_v44 = vadd.f32 %v327_v43, %v326_v42 }
 0x1e3   : > { %413 = vpush %v328_v44 }
 0x214   : > { %s414_s23 = spop %413 }
 0x215   : > { %v330_v45 = vstv %s414_s23 }
 0x216   : > { %v331_v46 = vmul.f32 -0.041666668, %v330_v45 }
 0x218   : > { %333 = vst.msk [vmem:[%s257_s26] sm:$0x1] %vm332_vm6, %v331_v46 }
 0x219 PF: > { %s12_s11 = sadd.s32 1, %s468_s11   ;;  %s541_s9 = smov %s464_s10 }
 0x21a   : > { %p9_p6 = scmp.ge.s32.totalorder %s12_s11, 4   ;;  %s542_s10 = smov %s544_s12 }
 0x21c   :  { %11 = sbr.rel (!%p9_p6) target bundleno = 2 (0x2), region = 69 }

</bundles_post_ra>
